<compile_context>
chip_gen: v7x
topology: tpu7x:2x2x1
jax: 0.10.0
libtpu: 0.0.40
codegen_flags: <defaults>
</compile_context>

<pallas_src>
import functools

import jax
import jax.numpy as jnp
from jax.experimental import pallas as pl
from jax.experimental.pallas import tpu as pltpu

INPUT_SIZE = 14 * 3   # 42
HIDDEN_SIZE = 128
OUTPUT_SIZE = 3
DEFAULT_TM = 4096     # rows per batch tile; sweep 2048-8192 if tuning


def _round_up(x, m):
    return ((x + m - 1) // m) * m


def _choose_tm(n, tm_requested):
    """Pick a legal, efficient batch-tile size (static Python ints)."""
    # Round the requested tile to the f32 sublane multiple (8); clamp to batch.
    tm = max(8, _round_up(int(tm_requested), 8))
    tm = min(tm, _round_up(n, 8))
    # Guarantee >= 2 grid steps when there is enough work so the "parallel"
    # batch axis can be sharded across both TensorCores on v7x.
    if n >= 16:
        tm = min(tm, max(8, _round_up(pl.cdiv(n, 2), 8)))
    return tm


def _mlp_kernel(x_ref, w1_ref, b1_ref, w2_ref, b2_ref, o_ref):
    # x_ref:  (TM, 42)  f32    w1_ref: (42, 128) bf16   b1_ref: (1, 128) f32
    # w2_ref: (128, 3)  bf16   b2_ref: (1, 3)    f32    o_ref:  (TM, 3)  f32
    #
    # bf16 MXU operands + f32 accumulation; bias/ReLU on the VPU in f32.
    x = x_ref[...].astype(jnp.bfloat16)
    h = jnp.dot(x, w1_ref[...], preferred_element_type=jnp.float32)
    h = jnp.maximum(h + b1_ref[...], 0.0)          # bias broadcast + ReLU
    y = jnp.dot(h.astype(jnp.bfloat16), w2_ref[...],
                preferred_element_type=jnp.float32)
    o_ref[...] = (y + b2_ref[...]).astype(o_ref.dtype)


@functools.partial(jax.jit, static_argnames=("tm",))
def atom_pos_mlp(x, w1, b1, w2, b2, *, tm=DEFAULT_TM):
    """x: (N, 14, 3) float32 -> (N, 3) float32."""
    n = x.shape[0]
    x2 = x.reshape(n, INPUT_SIZE)

    # MXU operands in bf16 (weights cast once here, activations in-kernel).
    w1_bf = w1.astype(jnp.bfloat16)
    w2_bf = w2.astype(jnp.bfloat16)

    tm = _choose_tm(n, tm)
    grid = (pl.cdiv(n, tm),)

    out = pl.pallas_call(
        _mlp_kernel,
        out_shape=jax.ShapeDtypeStruct((n, OUTPUT_SIZE), jnp.float32),
        grid_spec=pl.GridSpec(
            grid=grid,
            in_specs=[
                # Batch-tiled activation input (double-buffered by Pallas, so
                # its DMA overlaps MXU/VPU work of the previous tile).
                pl.BlockSpec((tm, INPUT_SIZE), lambda i: (i, 0)),
                # Weights / biases: constant block index -> VMEM-resident
                # across all grid steps.
                pl.BlockSpec((INPUT_SIZE, HIDDEN_SIZE), lambda i: (0, 0)),
                pl.BlockSpec((1, HIDDEN_SIZE), lambda i: (0, 0)),
                pl.BlockSpec((HIDDEN_SIZE, OUTPUT_SIZE), lambda i: (0, 0)),
                pl.BlockSpec((1, OUTPUT_SIZE), lambda i: (0, 0)),
            ],
            out_specs=pl.BlockSpec((tm, OUTPUT_SIZE), lambda i: (i, 0)),
        ),
        compiler_params=pltpu.CompilerParams(
            dimension_semantics=("parallel",),
            vmem_limit_bytes=32 * 1024 * 1024,
        ),
    )(x2, w1_bf, b1, w2_bf, b2)

    return out


def init_params(key):
    """Deterministic parameter init mirroring nn.Linear shapes.

    PyTorch stores weight as (out, in); we store the transpose (in, out)."""
    k1, k2, k3, k4 = jax.random.split(key, 4)
    bound1 = 1.0 / (INPUT_SIZE ** 0.5)
    bound2 = 1.0 / (HIDDEN_SIZE ** 0.5)
    w1 = jax.random.uniform(k1, (INPUT_SIZE, HIDDEN_SIZE), jnp.float32,
                            -bound1, bound1)
    b1 = jax.random.uniform(k2, (1, HIDDEN_SIZE), jnp.float32, -bound1, bound1)
    w2 = jax.random.uniform(k3, (HIDDEN_SIZE, OUTPUT_SIZE), jnp.float32,
                            -bound2, bound2)
    b2 = jax.random.uniform(k4, (1, OUTPUT_SIZE), jnp.float32, -bound2, bound2)
    return w1, b1, w2, b2


def reference_f32(x, w1, b1, w2, b2):
    """Pure-f32 reference matching the PyTorch module exactly."""
    x2 = x.reshape(x.shape[0], INPUT_SIZE)
    h = jnp.maximum(x2 @ w1 + b1, 0.0)
    return h @ w2 + b2


def reference_bf16(x, w1, b1, w2, b2):
    """Reference that mirrors the kernel's bf16-operand / f32-accum numerics."""
    x2 = x.reshape(x.shape[0], INPUT_SIZE).astype(jnp.bfloat16)
    h = jnp.dot(x2, w1.astype(jnp.bfloat16),
                preferred_element_type=jnp.float32) + b1
    h = jnp.maximum(h, 0.0)
    y = jnp.dot(h.astype(jnp.bfloat16), w2.astype(jnp.bfloat16),
                preferred_element_type=jnp.float32) + b2
    return y


if __name__ == "__main__":
    key = jax.random.PRNGKey(0)
    kp, kx1, kx2 = jax.random.split(key, 3)
    w1, b1, w2, b2 = init_params(kp)

    # Case 1: small batch, single (ragged) tile, default tm.
    n1 = 6
    x1 = jax.random.normal(kx1, (n1, 14, 3), jnp.float32)
    y1 = jax.block_until_ready(atom_pos_mlp(x1, w1, b1, w2, b2))
    assert y1.shape == (n1, OUTPUT_SIZE)
    # Tight check vs. a bf16-operand reference (same rounding as the kernel).
    assert jnp.allclose(y1, reference_bf16(x1, w1, b1, w2, b2),
                        atol=1e-3, rtol=1e-3)
    # Loose check vs. the pure-f32 PyTorch-equivalent reference; the delta
    # documents the bf16-MXU-operand tolerance change from the perf review.
    assert jnp.allclose(y1, reference_f32(x1, w1, b1, w2, b2),
                        atol=1e-1, rtol=1e-1)

    # Case 2: multi-step grid with a ragged final block, plus a user-supplied
    # tm (100) that is not a multiple of 8 (rounded up internally).
    n2 = 300
    x2 = jax.random.normal(kx2, (n2, 14, 3), jnp.float32)
    y2 = jax.block_until_ready(atom_pos_mlp(x2, w1, b1, w2, b2, tm=100))
    assert y2.shape == (n2, OUTPUT_SIZE)
    assert jnp.allclose(y2, reference_bf16(x2, w1, b1, w2, b2),
                        atol=1e-3, rtol=1e-3)
    assert jnp.allclose(y2, reference_f32(x2, w1, b1, w2, b2),
                        atol=1e-1, rtol=1e-1)

    print("KERNEL_OK")
</pallas_src>

<mosaic_0001>
module attributes {stable_mosaic.version = 11 : i64} {
  func.func @_mlp_kernel(%arg0: i32, %arg1: memref<8x42xf32, #tpu.memory_space<vmem>>, %arg2: memref<42x128xbf16, #tpu.memory_space<vmem>>, %arg3: memref<1x128xf32, #tpu.memory_space<vmem>>, %arg4: memref<128x3xbf16, #tpu.memory_space<vmem>>, %arg5: memref<1x3xf32, #tpu.memory_space<vmem>>, %arg6: memref<8x3xf32, #tpu.memory_space<vmem>>) attributes {dimension_semantics = [#tpu.dimension_semantics<parallel>], iteration_bounds = array<i64: 1>, scalar_prefetch = 0 : i64, scratch_operands = 0 : i64, tpu.core_type = #tpu.core_type<tc>, window_params = [{transform_indices = @transform_0, window_bounds = array<i64: 8, 42>}, {pipeline_mode = #tpu.pipeline_mode<synchronous>, transform_indices = @transform_1, window_bounds = array<i64: 42, 128>}, {pipeline_mode = #tpu.pipeline_mode<synchronous>, transform_indices = @transform_2, window_bounds = array<i64: 1, 128>}, {pipeline_mode = #tpu.pipeline_mode<synchronous>, transform_indices = @transform_3, window_bounds = array<i64: 128, 3>}, {pipeline_mode = #tpu.pipeline_mode<synchronous>, transform_indices = @transform_4, window_bounds = array<i64: 1, 3>}, {transform_indices = @transform_5, window_bounds = array<i64: 8, 3>}]} {
    %c0 = arith.constant 0 : index
    %c0_0 = arith.constant 0 : index
    %0 = vector.load %arg1[%c0, %c0_0] : memref<8x42xf32, #tpu.memory_space<vmem>>, vector<8x42xf32>
    %1 = arith.truncf %0 : vector<8x42xf32> to vector<8x42xbf16>
    %c0_1 = arith.constant 0 : index
    %c0_2 = arith.constant 0 : index
    %2 = vector.load %arg2[%c0_1, %c0_2] : memref<42x128xbf16, #tpu.memory_space<vmem>>, vector<42x128xbf16>
    %cst = arith.constant dense<0.000000e+00> : vector<8x128xf32>
    %3 = tpu.matmul %1, %2, %cst {dimension_numbers = #tpu.dot_dimension_numbers<[1], [0], [0], [1], [0, 0, 1, 1], [], []>} : vector<8x42xbf16>, vector<42x128xbf16>, vector<8x128xf32> -> vector<8x128xf32>
    %c0_3 = arith.constant 0 : index
    %c0_4 = arith.constant 0 : index
    %4 = vector.load %arg3[%c0_3, %c0_4] : memref<1x128xf32, #tpu.memory_space<vmem>>, vector<1x128xf32>
    %5 = vector.broadcast %4 : vector<1x128xf32> to vector<8x128xf32>
    %6 = arith.addf %3, %5 : vector<8x128xf32>
    %cst_5 = arith.constant 0.000000e+00 : f32
    %7 = vector.broadcast %cst_5 : f32 to vector<8x128xf32>
    %8 = arith.maximumf %6, %7 : vector<8x128xf32>
    %9 = arith.truncf %8 : vector<8x128xf32> to vector<8x128xbf16>
    %c0_6 = arith.constant 0 : index
    %c0_7 = arith.constant 0 : index
    %10 = vector.load %arg4[%c0_6, %c0_7] : memref<128x3xbf16, #tpu.memory_space<vmem>>, vector<128x3xbf16>
    %cst_8 = arith.constant dense<0.000000e+00> : vector<8x3xf32>
    %11 = tpu.matmul %9, %10, %cst_8 {dimension_numbers = #tpu.dot_dimension_numbers<[1], [0], [0], [1], [0, 0, 1, 1], [], []>} : vector<8x128xbf16>, vector<128x3xbf16>, vector<8x3xf32> -> vector<8x3xf32>
    %c0_9 = arith.constant 0 : index
    %c0_10 = arith.constant 0 : index
    %12 = vector.load %arg5[%c0_9, %c0_10] : memref<1x3xf32, #tpu.memory_space<vmem>>, vector<1x3xf32>
    %13 = vector.broadcast %12 : vector<1x3xf32> to vector<8x3xf32>
    %14 = arith.addf %11, %13 : vector<8x3xf32>
    %c0_11 = arith.constant 0 : index
    %c0_12 = arith.constant 0 : index
    %15 = vector.load %arg6[%c0_11, %c0_12] : memref<8x3xf32, #tpu.memory_space<vmem>>, vector<8x3xf32>
    tpu.vector_store %arg6[%c0_11, %c0_12], %14 {strides = array<i32>} : memref<8x3xf32, #tpu.memory_space<vmem>>, vector<8x3xf32>,
    return
  }
  func.func @transform_0(%arg0: i32) -> (i32, i32) {
    %c0_i32 = arith.constant 0 : i32
    %c0_i32_0 = arith.constant 0 : i32
    return %arg0, %c0_i32 : i32, i32
  }
  func.func @transform_1(%arg0: i32) -> (i32, i32) {
    %c0_i32 = arith.constant 0 : i32
    %c0_i32_0 = arith.constant 0 : i32
    %c0_i32_1 = arith.constant 0 : i32
    return %c0_i32, %c0_i32_0 : i32, i32
  }
  func.func @transform_2(%arg0: i32) -> (i32, i32) {
    %c0_i32 = arith.constant 0 : i32
    %c0_i32_0 = arith.constant 0 : i32
    %c0_i32_1 = arith.constant 0 : i32
    return %c0_i32, %c0_i32_0 : i32, i32
  }
  func.func @transform_3(%arg0: i32) -> (i32, i32) {
    %c0_i32 = arith.constant 0 : i32
    %c0_i32_0 = arith.constant 0 : i32
    %c0_i32_1 = arith.constant 0 : i32
    return %c0_i32, %c0_i32_0 : i32, i32
  }
  func.func @transform_4(%arg0: i32) -> (i32, i32) {
    %c0_i32 = arith.constant 0 : i32
    %c0_i32_0 = arith.constant 0 : i32
    %c0_i32_1 = arith.constant 0 : i32
    return %c0_i32, %c0_i32_0 : i32, i32
  }
  func.func @transform_5(%arg0: i32) -> (i32, i32) {
    %c0_i32 = arith.constant 0 : i32
    %c0_i32_0 = arith.constant 0 : i32
    return %arg0, %c0_i32 : i32, i32
  }
}

</mosaic_0001>

<bundles_post_ra>
// kernel: atom_pos_mlp.1
= control target key start
LH: loop header
LB: loop body
LE: loop exit
PB: predicated region body
PF: predicated region fallthrough
CT: control target
= control target key end

     0   :  { %v290_v0 = vmov 0.0   ;;  %vm291_vm0 = vmmov 0   ;;  %vm57_vm1 = vcmask 1044480   ;;  %vm53_vm2 = vcmask 343040   ;;  %s367_s1 = inlined_call_operand.vmem [shape: bf16[42,128], index: 1, kind: input, shape index: {}]   ;;  %s368_s3 = inlined_call_operand.vmem [shape: bf16[128,3], index: 3, kind: input, shape index: {}]   ;;  %s369_s0 = inlined_call_operand.vmem [shape: f32[6,42], index: 0, kind: input, shape index: {}]   ;;  %s370_s2 = inlined_call_operand.vmem [shape: f32[1,128], index: 2, kind: input, shape index: {}]   ;;  %s371_s4 = inlined_call_operand.vmem [shape: f32[1,3], index: 4, kind: input, shape index: {}]   ;;  %s372_s5 = inlined_call_operand.vmem [shape: f32[6,3], index: 5, kind: output, shape index: {}]  }
   0x1   :  { %247 = vmatprep.subr.bf16.mxu0 %v290_v0  ;;  %v279_v1 = vld [vmem:[%s367_s1] sm:$0xff]   ;;  %253 = vmatprep.mubr.msk.bf16.mxu0 %vm291_vm0, %v290_v0  ;;  %v280_v2 = vld [vmem:[%s367_s1 + $0x8] sm:$0xff]   ;;  %v281_v3 = vld [vmem:[%s367_s1 + $0x10] sm:$0x1f]   ;;  %vm214_vm3 = vcmask 23552  }
   0x2   :  { %257 = vmatprep.subr.bf16.mxu1 %v290_v0  ;;  %273 = vmatprep.mubr.msk.bf16.mxu1 %vm291_vm0, %v290_v0  ;;  %v282_v4 = vld [vmem:[%s368_s3] sm:$0xff]   ;;  %v283_v6 = vld [vmem:[%s368_s3 + $0x8] sm:$0xff]   ;;  %v59_v7 = vsel %vm57_vm1, %v281_v3, 0  ;;  %v284_v9 = vld [vmem:[%s368_s3 + $0x10] sm:$0xff]  }
   0x3   :  { %248 = vmatpush3.bf16.msra.mxu0 %v279_v1  ;;  %v21_v5 = vld [vmem:[%s369_s0] sm:$0xff]  ;;  %258 = vmatpush3.bf16.msra.mxu1 %v282_v4  ;;  %v285_v10 = vld [vmem:[%s368_s3 + $0x18] sm:$0xff]   ;;  %v287_v12 = vld [vmem:[%s368_s3 + $0x28] sm:$0xff]  }
   0x4   :  { %249 = vmatprep.subr.bf16.mxu0 %v290_v0  ;;  %259 = vmatprep.subr.bf16.mxu1 %v290_v0  ;;  %v22_v8 = vpack.c.bf16 %v21_v5, %v21_v5  ;;  %v286_v11 = vld [vmem:[%s368_s3 + $0x20] sm:$0xff]   ;;  %v288_v13 = vld [vmem:[%s368_s3 + $0x30] sm:$0xff]   ;;  %v289_v14 = vld [vmem:[%s368_s3 + $0x38] sm:$0xff]  }
   0x5   :  { %v220_v15 = vld [vmem:[%s370_s2] ss:$0 sm:$0xff] }
   0x6   :  { %v225_v23 = vld [vmem:[%s371_s4] ss:$0 sm:$0xff] }
   0x7   :  { %250 = vmatpush3.bf16.msra.mxu0 %v280_v2  ;;  %260 = vmatpush3.bf16.msra.mxu1 %v283_v6 }
   0x8   :  { %251 = vmatprep.subr.bf16.mxu0 %v290_v0  ;;  %261 = vmatprep.subr.bf16.mxu1 %v290_v0 }
   0xb   :  { %252 = vmatpush3.bf16.msra.mxu0 %v59_v7  ;;  %262 = vmatpush3.bf16.msra.mxu1 %v284_v9 }
   0xc   :  { %263 = vmatprep.subr.bf16.mxu1 %v290_v0 }
   0xe   :  { %254 = vmatmul.mubr.msk.bf16.vlgmr.msra.gmra.mrb[0].mxu0 %vm53_vm2, %v22_v8 }
   0xf   :  { %264 = vmatpush3.bf16.msra.mxu1 %v285_v10 }
  0x10   :  { %265 = vmatprep.subr.bf16.mxu1 %v290_v0 }
  0x13   :  { %266 = vmatpush3.bf16.msra.mxu1 %v286_v11 }
  0x14   :  { %267 = vmatprep.subr.bf16.mxu1 %v290_v0 }
  0x17   :  { %268 = vmatpush3.bf16.msra.mxu1 %v287_v12 }
  0x18   :  { %269 = vmatprep.subr.bf16.mxu1 %v290_v0 }
  0x1b   :  { %270 = vmatpush3.bf16.msra.mxu1 %v288_v13 }
  0x1c   :  { %271 = vmatprep.subr.bf16.mxu1 %v290_v0 }
  0x1f   :  { %272 = vmatpush3.bf16.msra.mxu1 %v289_v14 }
  0xe1   :  { %v95_v16 = vpop.f32.mrb[0].mxu0 }
  0xe2   :  { %v96_v17 = vadd.f32 %v220_v15, %v95_v16  ;;  %v255_v18 = vpop.f32.mrb[1].mxu0 }
  0xe3   :  { %v98_v19 = vpop.f32.mrb[2].mxu0 }
  0xe4   :  { %v101_v20 = vmax.f32 %v96_v17, 0.0  ;;  %v256_v21 = vpop.f32.mrb[3].mxu0 }
  0xe6   :  { %v102_v22 = vpack.c.bf16 %v101_v20, %v101_v20 }
  0xe8   :  { %274 = vmatmul.mubr.bf16.vlgmr.msra.gmra.mrb[0].mxu1 %v102_v22 }
 0x1bb   :  { %v208_v24 = vpop.f32.mrb[0].mxu1 }
 0x1bc   :  { %v209_v25 = vadd.f32 %v225_v23, %v208_v24  ;;  %v275_v26 = vpop.f32.mrb[1].mxu1 }
 0x1bd   :  { %v211_v27 = vpop.f32.mrb[2].mxu1 }
 0x1be   :  { %215 = vst.msk [vmem:[%s372_s5] sm:$0xff] %vm214_vm3, %v209_v25  ;;  %v276_v28 = vpop.f32.mrb[3].mxu1 }

</bundles_post_ra>
